<compile_context>
chip_gen: v5e
topology: v5e:2x2
jax: 0.10.0
libtpu: 0.0.40
codegen_flags: <defaults>
</compile_context>

<pallas_src>
import functools

import jax
import jax.numpy as jnp
from jax.experimental import pallas as pl
from jax.experimental.pallas import tpu as pltpu

LANE = 128


def _round_up(x, m):
    return (x + m - 1) // m * m


def _vmem_budget_bytes():
    """~75% of per-core physical VMEM (48 MiB on v7x, 96 MiB on v5e/v6e)."""
    cap = 128 * 1024 * 1024
    try:
        info = pltpu.get_tpu_info()
        cap = int(getattr(info, "vmem_capacity_bytes", cap) or cap)
    except Exception:
        pass
    return cap * 3 // 4


def _plan_tiles(n_pad, f_pad, h_pad, budget):
    """Pick (tile_m, tile_k, xw_resident, tile_m_proj).

    Tiles are multiples of 128 that divide n_pad, as large as the VMEM budget
    allows; >= 2 row tiles are kept when possible (even counts preferred
    implicitly) so the "parallel" row axis keeps both v7x TensorCores busy.
    """
    xw_bytes = n_pad * h_pad * 2                     # bf16 XW
    xw_resident = 2 * xw_bytes <= budget // 2        # double-buffer allocation

    k_cands = sorted({c for c in range(LANE, min(n_pad, 2048) + 1, LANE)
                      if n_pad % c == 0}, reverse=True)
    m_cands = sorted({c for c in range(LANE, min(n_pad, 512) + 1, LANE)
                      if n_pad % c == 0}, reverse=True)
    if n_pad >= 2 * LANE:
        keep = [c for c in m_cands if n_pad // c >= 2]
        if keep:
            m_cands = keep

    def agg_footprint(tm, tk):
        a = 2 * tm * tk                                   # int8 A, double buffered
        xw = 2 * xw_bytes if xw_resident else 2 * tk * h_pad * 2
        acc = tm * h_pad * 4
        out = 2 * tm * h_pad * 4
        misc = 4 * tm * 4 + 4 * h_pad * 4 + (1 << 20)
        return a + xw + acc + out + misc

    tile_m, tile_k, found = LANE, LANE, False
    for tm in m_cands:
        for tk in k_cands:
            if agg_footprint(tm, tk) <= budget:
                tile_m, tile_k, found = tm, tk, True
                break
        if found:
            break
    if not found:
        xw_resident = False

    def proj_footprint(tm):
        return (2 * tm * f_pad * 2 + 2 * f_pad * h_pad * 2
                + 2 * tm * h_pad * 2 + 4 * tm * 4 + (1 << 20))

    tile_m_proj = LANE
    for tm in m_cands:
        if proj_footprint(tm) <= budget:
            tile_m_proj = tm
            break

    return tile_m, tile_k, xw_resident, tile_m_proj


# --------------------------------------------------------------------------
# Pass 1: projection  XW[j] = dinv[j] * (X @ W)[j]
#   bf16 operands (cast once in the wrapper), f32 MXU accumulation, bf16 out.
#   The D^-1/2 column normalization of A_hat is folded in here.
# --------------------------------------------------------------------------
def _project_kernel(x_ref, w_ref, dinv_ref, out_ref):
    xw = jnp.dot(x_ref[...], w_ref[...], preferred_element_type=jnp.float32)
    out_ref[...] = (xw * dinv_ref[...]).astype(out_ref.dtype)


def _project(x, w, dinv, *, tile_m, vmem_limit):
    n, f = x.shape
    _, h = w.shape
    return pl.pallas_call(
        _project_kernel,
        out_shape=jax.ShapeDtypeStruct((n, h), jnp.bfloat16),
        grid_spec=pltpu.PrefetchScalarGridSpec(
            num_scalar_prefetch=0,
            grid=(n // tile_m,),
            in_specs=[
                pl.BlockSpec((tile_m, f), lambda i: (i, 0)),
                pl.BlockSpec((f, h), lambda i: (0, 0)),
                pl.BlockSpec((tile_m, 1), lambda i: (i, 0)),
            ],
            out_specs=pl.BlockSpec((tile_m, h), lambda i: (i, 0)),
        ),
        compiler_params=pltpu.CompilerParams(
            dimension_semantics=("parallel",),
            vmem_limit_bytes=vmem_limit,
        ),
    )(x, w, dinv)


# --------------------------------------------------------------------------
# Pass 2: aggregation  O[i] = relu?( dinv[i] * sum_k A[i,k] * XW[k] + b )
#   grid = (row tile "parallel", k tile "arbitrary"); f32 VMEM accumulator
#   with pl.when init/finalize; int8 A tile upcast to bf16 before the MXU dot.
#   XW is VMEM-resident (fetched once) when it fits the budget.
# --------------------------------------------------------------------------
def _aggregate_kernel(adj_ref, xw_ref, dinv_ref, b_ref, out_ref, acc_ref, *,
                      apply_relu, xw_resident, tile_k):
    k = pl.program_id(1)

    @pl.when(k == 0)
    def _():
        acc_ref[...] = jnp.zeros_like(acc_ref)

    a = adj_ref[...].astype(jnp.bfloat16)  # int8 edge counts -> bf16 (exact)
    if xw_resident:
        row0 = pl.multiple_of(k * tile_k, LANE)
        xw = xw_ref[pl.ds(row0, tile_k), :]
    else:
        xw = xw_ref[...]
    acc_ref[...] += jnp.dot(a, xw, preferred_element_type=jnp.float32)

    # row normalization + bias + activation hoisted out of the k loop
    @pl.when(k == pl.num_programs(1) - 1)
    def _():
        h = acc_ref[...] * dinv_ref[...] + b_ref[...]
        if apply_relu:
            h = jnp.maximum(h, 0.0)
        out_ref[...] = h.astype(out_ref.dtype)


def _aggregate(adj, xw, dinv, b, *, apply_relu, out_dtype,
               tile_m, tile_k, xw_resident, vmem_limit):
    n = adj.shape[0]
    h = xw.shape[1]
    kernel = functools.partial(_aggregate_kernel, apply_relu=apply_relu,
                               xw_resident=xw_resident, tile_k=tile_k)
    if xw_resident:
        # Constant block index -> DMA'd once, stays VMEM-resident (no re-stream
        # of the full XW matrix per row tile).
        xw_spec = pl.BlockSpec((n, h), lambda i, k: (0, 0))
    else:
        xw_spec = pl.BlockSpec((tile_k, h), lambda i, k: (k, 0))
    return pl.pallas_call(
        kernel,
        out_shape=jax.ShapeDtypeStruct((n, h), out_dtype),
        grid_spec=pltpu.PrefetchScalarGridSpec(
            num_scalar_prefetch=0,
            grid=(n // tile_m, n // tile_k),
            in_specs=[
                pl.BlockSpec((tile_m, tile_k), lambda i, k: (i, k)),  # int8 A tile
                xw_spec,
                pl.BlockSpec((tile_m, 1), lambda i, k: (i, 0)),       # dinv rows
                pl.BlockSpec((1, h), lambda i, k: (0, 0)),            # bias
            ],
            out_specs=pl.BlockSpec((tile_m, h), lambda i, k: (i, 0)),
            scratch_shapes=[pltpu.VMEM((tile_m, h), jnp.float32)],
        ),
        compiler_params=pltpu.CompilerParams(
            dimension_semantics=("parallel", "arbitrary"),
            vmem_limit_bytes=vmem_limit,
        ),
    )(adj, xw, dinv, b)


# --------------------------------------------------------------------------
# Plain-JAX glue: dense int8 edge-count matrix (A + I) and D^-1/2.
# Counts match PyG GCNConv semantics (duplicate edges scatter-summed).
# --------------------------------------------------------------------------
def build_adjacency(edge_index, num_nodes, padded_nodes):
    src = edge_index[0]
    dst = edge_index[1]
    loop = jnp.arange(num_nodes, dtype=edge_index.dtype)
    src = jnp.concatenate([src, loop])
    dst = jnp.concatenate([dst, loop])
    counts = jnp.zeros((padded_nodes, padded_nodes), jnp.int32).at[dst, src].add(1)
    deg = jnp.zeros((padded_nodes,), jnp.float32).at[dst].add(1.0)
    dinv = jnp.where(deg > 0.0, jax.lax.rsqrt(deg), 0.0).reshape(padded_nodes, 1)
    # int8 counts are exact for any sane edge multiplicity (< 128 duplicates).
    return counts.astype(jnp.int8), dinv


# --------------------------------------------------------------------------
# Forward pass:  relu(gcn1(x)) -> gcn2
# --------------------------------------------------------------------------
def graph_encoder_forward(x, edge_index, params):
    n, f_in = x.shape
    hidden = params["w1"].shape[1]

    f_pad = _round_up(f_in, LANE)
    h_pad = _round_up(hidden, LANE)
    n_pad = _round_up(n, LANE)  # pad N only to 128 — no quadratic padding blowup

    budget = _vmem_budget_bytes()
    tile_m, tile_k, xw_resident, tile_m_proj = _plan_tiles(n_pad, f_pad, h_pad, budget)

    adj, dinv = build_adjacency(edge_index, n, n_pad)  # int8 [n_pad,n_pad], f32 [n_pad,1]

    # bf16 operands in HBM: halves X/W reads, removes per-tile VPU casts.
    # (Note: if raw node features have huge dynamic range, this bf16 cast of X
    #  loses precision in layer 1 — acceptable for normalized AIG features.)
    x_p = jnp.zeros((n_pad, f_pad), jnp.bfloat16).at[:n, :f_in].set(
        x.astype(jnp.bfloat16))
    w1_p = jnp.zeros((f_pad, h_pad), jnp.bfloat16).at[:f_in, :hidden].set(
        params["w1"].astype(jnp.bfloat16))
    b1_p = jnp.zeros((1, h_pad), jnp.float32).at[:, :hidden].set(params["b1"])
    w2_p = jnp.zeros((h_pad, h_pad), jnp.bfloat16).at[:hidden, :hidden].set(
        params["w2"].astype(jnp.bfloat16))
    b2_p = jnp.zeros((1, h_pad), jnp.float32).at[:, :hidden].set(params["b2"])

    # Layer 1: relu( A_hat @ (X @ W1) + b1 )   [normalization folded]
    xw1 = _project(x_p, w1_p, dinv, tile_m=tile_m_proj, vmem_limit=budget)
    h1 = _aggregate(adj, xw1, dinv, b1_p, apply_relu=True, out_dtype=jnp.bfloat16,
                    tile_m=tile_m, tile_k=tile_k, xw_resident=xw_resident,
                    vmem_limit=budget)

    # Layer 2: A_hat @ (H1 @ W2) + b2
    xw2 = _project(h1, w2_p, dinv, tile_m=tile_m_proj, vmem_limit=budget)
    h2 = _aggregate(adj, xw2, dinv, b2_p, apply_relu=False, out_dtype=jnp.float32,
                    tile_m=tile_m, tile_k=tile_k, xw_resident=xw_resident,
                    vmem_limit=budget)

    return h2[:n, :hidden]


def init_params(key, input_dim, hidden_dim):
    k1, k2 = jax.random.split(key)

    def glorot(k, shape):
        lim = jnp.sqrt(6.0 / (shape[0] + shape[1]))
        return jax.random.uniform(k, shape, jnp.float32, -lim, lim)

    return {
        "w1": glorot(k1, (input_dim, hidden_dim)),
        "b1": jnp.zeros((1, hidden_dim), jnp.float32),
        "w2": glorot(k2, (hidden_dim, hidden_dim)),
        "b2": jnp.zeros((1, hidden_dim), jnp.float32),
    }


def _reference(x, edge_index, params):
    """Plain-JAX f32 reference (PyG GCNConv semantics)."""
    n = x.shape[0]
    src, dst = edge_index[0], edge_index[1]
    loop = jnp.arange(n, dtype=edge_index.dtype)
    src = jnp.concatenate([src, loop])
    dst = jnp.concatenate([dst, loop])
    a = jnp.zeros((n, n), jnp.float32).at[dst, src].add(1.0)
    deg = a.sum(axis=1)
    dinv = jnp.where(deg > 0, jax.lax.rsqrt(deg), 0.0)
    a_hat = dinv[:, None] * a * dinv[None, :]
    h = jnp.maximum(a_hat @ (x @ params["w1"]) + params["b1"], 0.0)
    return a_hat @ (h @ params["w2"]) + params["b2"]


if __name__ == "__main__":
    key = jax.random.PRNGKey(0)
    kx, kp, ke = jax.random.split(key, 3)

    num_nodes, input_dim, hidden_dim, num_edges = 8, 4, 32, 16

    x = jax.random.normal(kx, (num_nodes, input_dim), jnp.float32)
    edge_index = jax.random.randint(ke, (2, num_edges), 0, num_nodes, jnp.int32)
    params = init_params(kp, input_dim, hidden_dim)

    out = graph_encoder_forward(x, edge_index, params)
    out = jax.block_until_ready(out)

    assert out.shape == (num_nodes, hidden_dim)
    assert jnp.all(jnp.isfinite(out))

    ref = _reference(x, edge_index, params)
    max_err = float(jnp.max(jnp.abs(out - ref)))
    assert max_err < 1e-1, f"mismatch vs f32 reference: {max_err}"

    print("KERNEL_OK")
</pallas_src>

<mosaic_0001>
module attributes {stable_mosaic.version = 11 : i64} {
  func.func @_project_kernel(%arg0: i32, %arg1: memref<128x128xbf16, #tpu.memory_space<vmem>>, %arg2: memref<128x128xbf16, #tpu.memory_space<vmem>>, %arg3: memref<128x1xf32, #tpu.memory_space<vmem>>, %arg4: memref<128x128xbf16, #tpu.memory_space<vmem>>) attributes {dimension_semantics = [#tpu.dimension_semantics<parallel>], iteration_bounds = array<i64: 1>, scalar_prefetch = 0 : i64, scratch_operands = 0 : i64, tpu.core_type = #tpu.core_type<tc>, window_params = [{transform_indices = @transform_0, window_bounds = array<i64: 128, 128>}, {pipeline_mode = #tpu.pipeline_mode<synchronous>, transform_indices = @transform_1, window_bounds = array<i64: 128, 128>}, {transform_indices = @transform_2, window_bounds = array<i64: 128, 1>}, {transform_indices = @transform_3, window_bounds = array<i64: 128, 128>}]} {
    %c0 = arith.constant 0 : index
    %c0_0 = arith.constant 0 : index
    %0 = vector.load %arg1[%c0, %c0_0] : memref<128x128xbf16, #tpu.memory_space<vmem>>, vector<128x128xbf16>
    %c0_1 = arith.constant 0 : index
    %c0_2 = arith.constant 0 : index
    %1 = vector.load %arg2[%c0_1, %c0_2] : memref<128x128xbf16, #tpu.memory_space<vmem>>, vector<128x128xbf16>
    %cst = arith.constant dense<0.000000e+00> : vector<128x128xf32>
    %2 = tpu.matmul %0, %1, %cst {dimension_numbers = #tpu.dot_dimension_numbers<[1], [0], [0], [1], [0, 0, 1, 1], [], []>} : vector<128x128xbf16>, vector<128x128xbf16>, vector<128x128xf32> -> vector<128x128xf32>
    %c0_3 = arith.constant 0 : index
    %c0_4 = arith.constant 0 : index
    %3 = vector.load %arg3[%c0_3, %c0_4] : memref<128x1xf32, #tpu.memory_space<vmem>>, vector<128x1xf32>
    %4 = vector.broadcast %3 : vector<128x1xf32> to vector<128x128xf32>
    %5 = arith.mulf %2, %4 : vector<128x128xf32>
    %6 = arith.truncf %5 : vector<128x128xf32> to vector<128x128xbf16>
    %c0_5 = arith.constant 0 : index
    %c0_6 = arith.constant 0 : index
    %7 = vector.load %arg4[%c0_5, %c0_6] : memref<128x128xbf16, #tpu.memory_space<vmem>>, vector<128x128xbf16>
    tpu.vector_store %arg4[%c0_5, %c0_6], %6 {strides = array<i32>} : memref<128x128xbf16, #tpu.memory_space<vmem>>, vector<128x128xbf16>,
    return
  }
  func.func @transform_0(%arg0: i32) -> (i32, i32) {
    %c0_i32 = arith.constant 0 : i32
    %c0_i32_0 = arith.constant 0 : i32
    return %arg0, %c0_i32 : i32, i32
  }
  func.func @transform_1(%arg0: i32) -> (i32, i32) {
    %c0_i32 = arith.constant 0 : i32
    %c0_i32_0 = arith.constant 0 : i32
    %c0_i32_1 = arith.constant 0 : i32
    return %c0_i32, %c0_i32_0 : i32, i32
  }
  func.func @transform_2(%arg0: i32) -> (i32, i32) {
    %c0_i32 = arith.constant 0 : i32
    %c0_i32_0 = arith.constant 0 : i32
    return %arg0, %c0_i32 : i32, i32
  }
  func.func @transform_3(%arg0: i32) -> (i32, i32) {
    %c0_i32 = arith.constant 0 : i32
    %c0_i32_0 = arith.constant 0 : i32
    return %arg0, %c0_i32 : i32, i32
  }
}

</mosaic_0001>

<bundles_post_ra>
// kernel: tpu_custom_call.1
= control target key start
LH: loop header
LB: loop body
LE: loop exit
PB: predicated region body
PF: predicated region fallthrough
CT: control target
= control target key end

     0   :  { %v538_v2 = vmov 0   ;;  %s661_s0 = inlined_call_operand.vmem [shape: bf16[128,128], index: 0, kind: input, shape index: {}]   ;;  %s662_s1 = inlined_call_operand.vmem [shape: bf16[128,128], index: 1, kind: input, shape index: {}]   ;;  %s663_s2 = inlined_call_operand.vmem [shape: f32[128,1], index: 2, kind: input, shape index: {}]   ;;  %s664_s3 = inlined_call_operand.hbm [shape: bf16[128,128], index: 3, kind: output, shape index: {}]  }
   0x1   :  { %v192_v0 = vld [vmem:[%s663_s2] sm:$0xff]  ;;  %v433_v1 = vld [vmem:[%s662_s1 + $0x38] sm:$0xff]  ;;  %509 = vset.pattern.permute.xlu0 %v538_v2  ;;  %510 = vset.pattern.permute.xlu1 %v538_v2  ;;  %v194_v3 = vld [vmem:[%s663_s2 + $0x10] sm:$0xff] }
   0x2   :  { %210 = vperm.xlu0 %509, %v192_v0   ;;  %143 = vmatpush.bf16.msra.mxu0 %v433_v1  ;;  %v432_v4 = vld [vmem:[%s662_s1 + $0x30] sm:$0xff]  ;;  %v431_v5 = vld [vmem:[%s662_s1 + $0x28] sm:$0xff]  ;;  %v196_v6 = vld [vmem:[%s663_s2 + $0x20] sm:$0xff] }
   0x3   :  { %481 = vmatpush.bf16.msra.mxu1 %v433_v1  ;;  %482 = vmatpush.bf16.msra.mxu2 %v433_v1  ;;  %v193_v7 = vld [vmem:[%s663_s2 + $0x8] sm:$0xff] }
   0x4   :  { %483 = vmatpush.bf16.msra.mxu3 %v433_v1  ;;  %220 = vperm.xlu1 %510, %v194_v3  }
   0x5   :  { %511 = vset.pattern.permute.xlu2 %v538_v2 }
   0x6   :  { %144 = vmatpush.bf16.msra.mxu0 %v432_v4 }
   0x7   :  { %484 = vmatpush.bf16.msra.mxu1 %v432_v4  ;;  %485 = vmatpush.bf16.msra.mxu2 %v432_v4 }
   0x8   :  { %8 = vsyncpa [#allocation3], 0  ;;  %486 = vmatpush.bf16.msra.mxu3 %v432_v4  ;;  %230 = vperm.xlu2 %511, %v196_v6   ;;  %v195_v8 = vld [vmem:[%s663_s2 + $0x18] sm:$0xff]  ;;  %v430_v9 = vld [vmem:[%s662_s1 + $0x20] sm:$0xff]  ;;  %s342_s23 = sshll.u32 %s664_s3, 4  ;;  %s540_s24 = smov 64   ;;  %s343_s23 = int_to_ptr.hbm [resolvable:$true] %s342_s23 }
   0x9   :  { %v197_v10 = vld [vmem:[%s663_s2 + $0x28] sm:$0xff]  ;;  %v429_v11 = vld [vmem:[%s662_s1 + $0x18] sm:$0xff]  ;;  %v198_v12 = vld [vmem:[%s663_s2 + $0x30] sm:$0xff]  ;;  %s541_s25 = smov 4  }
   0xa   :  { %215 = vperm.xlu0 %509, %v193_v7   ;;  %145 = vmatpush.bf16.msra.mxu0 %v431_v5  ;;  %v199_v13 = vld [vmem:[%s663_s2 + $0x38] sm:$0xff]  ;;  %v428_v14 = vld [vmem:[%s662_s1 + $0x10] sm:$0xff]  ;;  %v200_v15 = vld [vmem:[%s663_s2 + $0x40] sm:$0xff] }
   0xb   :  { %487 = vmatpush.bf16.msra.mxu1 %v431_v5  ;;  %488 = vmatpush.bf16.msra.mxu2 %v431_v5  ;;  %v427_v16 = vld [vmem:[%s662_s1 + $0x8] sm:$0xff]  ;;  %v202_v18 = vld [vmem:[%s663_s2 + $0x50] sm:$0xff]  ;;  %v426_v19 = vld [vmem:[%s662_s1] sm:$0xff] }
   0xc   :  { %489 = vmatpush.bf16.msra.mxu3 %v431_v5  ;;  %225 = vperm.xlu1 %510, %v195_v8   ;;  %v201_v17 = vld [vmem:[%s663_s2 + $0x48] sm:$0xff]  ;;  %v418_v20 = vld [vmem:[%s661_s0] sm:$0xff]  ;;  %v203_v21 = vld [vmem:[%s663_s2 + $0x58] sm:$0xff] }
   0xd   :  { %v420_v22 = vld [vmem:[%s661_s0 + $0x10] sm:$0xff]  ;;  %v204_v23 = vld [vmem:[%s663_s2 + $0x60] sm:$0xff]  ;;  %v205_v26 = vld [vmem:[%s663_s2 + $0x68] sm:$0xff] }
   0xe   :  { %146 = vmatpush.bf16.msra.mxu0 %v430_v9  ;;  %v422_v24 = vld [vmem:[%s661_s0 + $0x20] sm:$0xff]  ;;  %v424_v25 = vld [vmem:[%s661_s0 + $0x30] sm:$0xff]  ;;  %v207_v28 = vld [vmem:[%s663_s2 + $0x78] sm:$0xff] }
   0xf   :  { %490 = vmatpush.bf16.msra.mxu1 %v430_v9  ;;  %491 = vmatpush.bf16.msra.mxu2 %v430_v9  ;;  %v206_v27 = vld [vmem:[%s663_s2 + $0x70] sm:$0xff]  ;;  %v419_v29 = vld [vmem:[%s661_s0 + $0x8] sm:$0xff]  ;;  %v421_v30 = vld [vmem:[%s661_s0 + $0x18] sm:$0xff] }
  0x10   :  { %492 = vmatpush.bf16.msra.mxu3 %v430_v9  ;;  %235 = vperm.xlu2 %511, %v197_v10   ;;  %v423_v31 = vld [vmem:[%s661_s0 + $0x28] sm:$0xff]  ;;  %v425_v32 = vld [vmem:[%s661_s0 + $0x38] sm:$0xff]  ;;  %s539_s0 = smov [#allocation2]  }
  0x11   :  { %s340_s2 = sshll.u32 %s539_s0, 4  ;;  %s341_s2 = int_to_ptr.vmem [resolvable:$true] %s340_s2 }
  0x12   :  { %240 = vperm.xlu0 %509, %v198_v12   ;;  %147 = vmatpush.bf16.msra.mxu0 %v429_v11 }
  0x13   :  { %493 = vmatpush.bf16.msra.mxu1 %v429_v11  ;;  %494 = vmatpush.bf16.msra.mxu2 %v429_v11 }
  0x14   :  { %495 = vmatpush.bf16.msra.mxu3 %v429_v11  ;;  %245 = vperm.xlu1 %510, %v199_v13  }
  0x16   :  { %148 = vmatpush.bf16.msra.mxu0 %v428_v14 }
  0x17   :  { %496 = vmatpush.bf16.msra.mxu1 %v428_v14  ;;  %497 = vmatpush.bf16.msra.mxu2 %v428_v14 }
  0x18   :  { %498 = vmatpush.bf16.msra.mxu3 %v428_v14  ;;  %250 = vperm.xlu2 %511, %v200_v15  }
  0x1a   :  { %255 = vperm.xlu0 %509, %v201_v17   ;;  %149 = vmatpush.bf16.msra.mxu0 %v427_v16 }
  0x1b   :  { %499 = vmatpush.bf16.msra.mxu1 %v427_v16  ;;  %500 = vmatpush.bf16.msra.mxu2 %v427_v16 }
  0x1c   :  { %501 = vmatpush.bf16.msra.mxu3 %v427_v16  ;;  %260 = vperm.xlu1 %510, %v202_v18  }
  0x1e   :  { %150 = vmatpush.bf16.msra.mxu0 %v426_v19 }
  0x1f   :  { %502 = vmatpush.bf16.msra.mxu1 %v426_v19  ;;  %503 = vmatpush.bf16.msra.mxu2 %v426_v19 }
  0x20   :  { %504 = vmatpush.bf16.msra.mxu3 %v426_v19  ;;  %265 = vperm.xlu2 %511, %v203_v21  }
  0x21   :  { %151 = vmatmul.bf16.vlgmr.msra.gmra.mxu0 %v418_v20 }
  0x22   :  { %270 = vperm.xlu0 %509, %v204_v23   ;;  %161 = vmatmul.bf16.vlgmr.msra.gmra.mxu1 %v420_v22 }
  0x23   :  { %171 = vmatmul.bf16.vlgmr.msra.gmra.mxu2 %v422_v24  ;;  %181 = vmatmul.bf16.vlgmr.msra.gmra.mxu3 %v424_v25 }
  0x24   :  { %275 = vperm.xlu1 %510, %v205_v26  }
  0x28   :  { %280 = vperm.xlu2 %511, %v206_v27  }
  0x2a   :  { %285 = vperm.xlu0 %509, %v207_v28  }
  0x31   :  { %156 = vmatmul.bf16.gmra.mxu0 %v419_v29 }
  0x32   :  { %166 = vmatmul.bf16.gmra.mxu1 %v421_v30 }
  0x33   :  { %176 = vmatmul.bf16.gmra.mxu2 %v423_v31  ;;  %186 = vmatmul.bf16.gmra.mxu3 %v425_v32 }
  0x62   :  { %v231_v37 = vpop.permute.xlu2 %230 }
  0x6a   :  { %v236_v41 = vpop.permute.xlu2 %235 }
  0x72   :  { %v251_v53 = vpop.permute.xlu2 %250 }
  0x74   :  { %v211_v33 = vpop.permute.xlu0 %210 }
  0x76   :  { %v221_v34 = vpop.permute.xlu1 %220 }
  0x7a   :  { %v266_v4 = vpop.permute.xlu2 %265 }
  0x7c   :  { %v216_v35 = vpop.permute.xlu0 %215 }
  0x7e   :  { %v226_v36 = vpop.permute.xlu1 %225 }
  0x82   :  { %v281_v16 = vpop.permute.xlu2 %280 }
  0x84   :  { %v241_v38 = vpop.permute.xlu0 %240 }
  0x86   :  { %v246_v39 = vpop.permute.xlu1 %245 }
  0x8c   :  { %v256_v43 = vpop.permute.xlu0 %255 }
  0x8e   :  { %v261_v44 = vpop.permute.xlu1 %260 }
  0x94   :  { %v271_v56 = vpop.permute.xlu0 %270 }
  0x96   :  { %v276_v57 = vpop.permute.xlu1 %275 }
  0x9c   :  { %v286_v15 = vpop.permute.xlu0 %285 }
  0x9e   :  { %v152_v40 = vpop.f32.mrf.mxu0 }
  0x9f   :  { %v162_v42 = vpop.f32.mrf.mxu1  ;;  %v288_v49 = vmul.f32 %v211_v33, %v152_v40 }
  0xa0   :  { %v292_v50 = vmul.f32 %v231_v37, %v162_v42 }
  0xa6   :  { %v172_v45 = vpop.f32.mrf.mxu2  ;;  %v182_v46 = vpop.f32.mrf.mxu3 }
  0xa7   :  { %v154_v47 = vpop.f32.mrf.mxu0  ;;  %v164_v48 = vpop.f32.mrf.mxu1  ;;  %v296_v60 = vmul.f32 %v251_v53, %v172_v45  ;;  %v300_v61 = vmul.f32 %v271_v56, %v182_v46 }
  0xa8   :  { %v289_v51 = vmul.f32 %v216_v35, %v154_v47  ;;  %v293_v52 = vmul.f32 %v236_v41, %v164_v48 }
  0xaa   :  { %v437_v54 = vpack.c.bf16 %v289_v51, %v288_v49  ;;  %v447_v55 = vpack.c.bf16 %v293_v52, %v292_v50 }
  0xac   :  { %438 = vst [vmem:[#allocation2] sm:$0xff] %v437_v54  }
  0xad   :  { %475 = vst [vmem:[#allocation2 + $0x10] sm:$0xff] %v447_v55  }
  0xae   :  { %v174_v58 = vpop.f32.mrf.mxu2  ;;  %v184_v59 = vpop.f32.mrf.mxu3 }
  0xaf   :  { %v297_v62 = vmul.f32 %v256_v43, %v174_v58  ;;  %v301_v63 = vmul.f32 %v276_v57, %v184_v59  ;;  %v157_v0 = vpop.f32.mrf.mxu0  ;;  %v167_v1 = vpop.f32.mrf.mxu1 }
  0xb0   :  { %v290_v9 = vmul.f32 %v221_v34, %v157_v0  ;;  %v294_v10 = vmul.f32 %v241_v38, %v167_v1 }
  0xb1   :  { %v457_v2 = vpack.c.bf16 %v297_v62, %v296_v60  ;;  %v467_v3 = vpack.c.bf16 %v301_v63, %v300_v61 }
  0xb3   :  { %477 = vst [vmem:[#allocation2 + $0x20] sm:$0xff] %v457_v2  }
  0xb4   :  { %479 = vst [vmem:[#allocation2 + $0x30] sm:$0xff] %v467_v3  }
  0xb6   :  { %v177_v5 = vpop.f32.mrf.mxu2  ;;  %v187_v6 = vpop.f32.mrf.mxu3 }
  0xb7   :  { %v159_v7 = vpop.f32.mrf.mxu0  ;;  %v169_v8 = vpop.f32.mrf.mxu1  ;;  %v298_v19 = vmul.f32 %v261_v44, %v177_v5  ;;  %v302_v20 = vmul.f32 %v281_v16, %v187_v6 }
  0xb8   :  { %v291_v11 = vmul.f32 %v226_v36, %v159_v7  ;;  %v295_v12 = vmul.f32 %v246_v39, %v169_v8 }
  0xba   :  { %v442_v13 = vpack.c.bf16 %v291_v11, %v290_v9  ;;  %v452_v14 = vpack.c.bf16 %v295_v12, %v294_v10 }
  0xbc   :  { %474 = vst [vmem:[#allocation2 + $0x8] sm:$0xff] %v442_v13  }
  0xbd   :  { %476 = vst [vmem:[#allocation2 + $0x18] sm:$0xff] %v452_v14  }
  0xbe   :  { %v179_v17 = vpop.f32.mrf.mxu2  ;;  %v189_v18 = vpop.f32.mrf.mxu3 }
  0xbf   :  { %v299_v21 = vmul.f32 %v266_v4, %v179_v17  ;;  %v303_v22 = vmul.f32 %v286_v15, %v189_v18 }
  0xc1   :  { %v462_v23 = vpack.c.bf16 %v299_v21, %v298_v19  ;;  %v472_v24 = vpack.c.bf16 %v303_v22, %v302_v20 }
  0xc3   :  { %478 = vst [vmem:[#allocation2 + $0x28] sm:$0xff] %v462_v23  }
  0xc4   :  { %480 = vst [vmem:[#allocation2 + $0x38] sm:$0xff] %v472_v24  }
  0xc5   :  { %348 = dma.vmem_to_hbm [thread:$0]  %s341_s2, 1024, %s343_s23, [#allocation3], %s540_s24, %s540_s24, %s541_s25  }
  0xc6   :  { %536 = dma.done.wait [#allocation3], 1024  }
  0xc7   :  { %537 = vsyncadd [#allocation3], 4294966272 }
  0xc8   :  { %353 = vsyncpa [#allocation3], 1 }

</bundles_post_ra>
